<compile_context>
chip_gen: v7x
topology: tpu7x:2x2x1
jax: 0.10.0
libtpu: 0.0.40
codegen_flags: <defaults>
</compile_context>

<pallas_src>
import functools

import jax
import jax.numpy as jnp
from jax.experimental import pallas as pl
from jax.experimental.pallas import tpu as pltpu


class LSTMConvATTNConfig:
    seq_len = 8
    hidden_size = 32
    input_size = 16
    output_len = 4  # unused in the forward pass


def _lstm_kernel(x_ref, w_ih_ref, w_hh_ref, b_ref, out_ref, *, seq_len, b_pad, hidden):
    """Single-invocation LSTM kernel.

    x_ref   : [T*B_pad, I]      time-major, sublane-padded input
    w_ih_ref: [I, 4H]           transposed input weights (i/f/o columns pre-scaled by 0.5)
    w_hh_ref: [H, 4H]           transposed recurrent weights (i/f/o columns pre-scaled by 0.5)
    b_ref   : [1, 4H]           fused bias b_ih + b_hh (i/f/o lanes pre-scaled by 0.5)
    out_ref : [B_pad, (T+1)*H]  lane-dense slab: [h_0 | h_1 | ... | h_{T-1} | c_T]
    """
    w_hh = w_hh_ref[...]          # [H, 4H], pinned in vregs across all steps
    bias = b_ref[...]             # [1, 4H]

    # Input projection for every time step in one MXU pass (off the recurrent chain).
    xg = jnp.dot(x_ref[...], w_ih_ref[...],
                 preferred_element_type=jnp.float32) + bias          # [T*B_pad, 4H]

    h = jnp.zeros((b_pad, hidden), jnp.float32)
    c = jnp.zeros((b_pad, hidden), jnp.float32)
    hs = []

    for t in range(seq_len):  # statically unrolled: T is tiny and fixed
        # Contiguous full-vreg static slice (time-major + 8-row padding): no gather.
        xg_t = xg[t * b_pad:(t + 1) * b_pad, :]

        # Only MXU op on the per-step serial path.
        gates = xg_t + jnp.dot(h, w_hh, preferred_element_type=jnp.float32)  # [B_pad, 4H]

        # Single EUP slab per step: i/f/o columns were pre-scaled by 0.5 on the host,
        # so sigmoid(raw) = 0.5*(tanh(raw/2)+1) and tanh(g) come out of ONE tanh.
        tg = jnp.tanh(gates)
        i_g = 0.5 * (tg[:, 0 * hidden:1 * hidden] + 1.0)
        f_g = 0.5 * (tg[:, 1 * hidden:2 * hidden] + 1.0)
        g_g = tg[:, 2 * hidden:3 * hidden]
        o_g = 0.5 * (tg[:, 3 * hidden:4 * hidden] + 1.0)

        c = f_g * c + i_g * g_g
        h = o_g * jnp.tanh(c)
        hs.append(h)

    # Single lane-dense store after the loop; c_n rides along as the last H lanes.
    out_ref[...] = jnp.concatenate(hs + [c], axis=1).astype(out_ref.dtype)


def prepare_encoder_params(w_ih, w_hh, b_ih, b_hh):
    """One-time (init-time) parameter prep, hoisted out of the per-call path.

    PyTorch layout: w_ih [4H, I], w_hh [4H, H], gate row order (i, f, g, o).
    Returns transposed weights and a fused bias with the i/f/o gate blocks
    pre-scaled by 0.5 (enables the single-tanh gate nonlinearity in the kernel).
    """
    H = w_hh.shape[1]
    scale = jnp.concatenate([
        jnp.full((H,), 0.5, jnp.float32),   # i
        jnp.full((H,), 0.5, jnp.float32),   # f
        jnp.ones((H,), jnp.float32),        # g (stays raw: needs plain tanh)
        jnp.full((H,), 0.5, jnp.float32),   # o
    ])
    w_ih_t = (w_ih * scale[:, None]).T.astype(jnp.float32)          # [I, 4H]
    w_hh_t = (w_hh * scale[:, None]).T.astype(jnp.float32)          # [H, 4H]
    bias = ((b_ih + b_hh) * scale).reshape(1, 4 * H).astype(jnp.float32)
    return w_ih_t, w_hh_t, bias


@jax.jit
def encoder_rnn_forward(inputs, w_ih_t, w_hh_t, bias):
    """inputs: [B, T, I] f32. Returns (output [B,T,H], (h_n [1,B,H], c_n [1,B,H]))."""
    B, T, I = inputs.shape
    H = w_hh_t.shape[0]
    B_pad = -(-B // 8) * 8  # pad batch rows to full sublanes (free on the VPU/MXU)

    # Tiny (~1 KiB) input re-layout: time-major + sublane padding, fuses into one copy.
    x_tm = jnp.swapaxes(inputs, 0, 1)                                 # [T, B, I]
    x_tm = jnp.pad(x_tm, ((0, 0), (0, B_pad - B), (0, 0)))            # [T, B_pad, I]
    x2d = x_tm.reshape(T * B_pad, I)

    kernel = functools.partial(_lstm_kernel, seq_len=T, b_pad=B_pad, hidden=H)

    slab = pl.pallas_call(
        kernel,
        out_shape=jax.ShapeDtypeStruct((B_pad, (T + 1) * H), jnp.float32),
        in_specs=[pl.BlockSpec(memory_space=pltpu.MemorySpace.VMEM)] * 4,
        out_specs=pl.BlockSpec(memory_space=pltpu.MemorySpace.VMEM),
    )(x2d, w_ih_t, w_hh_t, bias)

    output = slab[:B, :T * H].reshape(B, T, H)      # batch_first output
    h_n = output[:, -1, :][None]                    # h_n == last time step
    c_n = slab[:B, T * H:][None]                    # c_n rode along in the slab
    return output, (h_n, c_n)


def _init_lstm_params(key, input_size, hidden_size):
    """Deterministic init mimicking PyTorch's U(-1/sqrt(H), 1/sqrt(H))."""
    k1, k2, k3, k4 = jax.random.split(key, 4)
    bound = 1.0 / jnp.sqrt(jnp.float32(hidden_size))
    w_ih = jax.random.uniform(k1, (4 * hidden_size, input_size), jnp.float32, -bound, bound)
    w_hh = jax.random.uniform(k2, (4 * hidden_size, hidden_size), jnp.float32, -bound, bound)
    b_ih = jax.random.uniform(k3, (4 * hidden_size,), jnp.float32, -bound, bound)
    b_hh = jax.random.uniform(k4, (4 * hidden_size,), jnp.float32, -bound, bound)
    return w_ih, w_hh, b_ih, b_hh


def _reference_lstm(inputs, w_ih, w_hh, b_ih, b_hh):
    """Pure-JAX reference (PyTorch nn.LSTM semantics) for correctness checking."""
    B, T, I = inputs.shape
    H = w_hh.shape[1]
    h = jnp.zeros((B, H), jnp.float32)
    c = jnp.zeros((B, H), jnp.float32)

    def step(carry, x_t):
        h, c = carry
        gates = x_t @ w_ih.T + b_ih + h @ w_hh.T + b_hh
        i_g = jax.nn.sigmoid(gates[:, 0 * H:1 * H])
        f_g = jax.nn.sigmoid(gates[:, 1 * H:2 * H])
        g_g = jnp.tanh(gates[:, 2 * H:3 * H])
        o_g = jax.nn.sigmoid(gates[:, 3 * H:4 * H])
        c_new = f_g * c + i_g * g_g
        h_new = o_g * jnp.tanh(c_new)
        return (h_new, c_new), h_new

    (h_n, c_n), outs = jax.lax.scan(step, (h, c), jnp.transpose(inputs, (1, 0, 2)))
    return jnp.transpose(outs, (1, 0, 2)), (h_n[None], c_n[None])


if __name__ == "__main__":
    cfg = LSTMConvATTNConfig
    batch = 2
    key = jax.random.PRNGKey(0)
    k_x, k_p = jax.random.split(key)

    inputs = jax.random.normal(k_x, (batch, cfg.seq_len, cfg.input_size), jnp.float32)
    w_ih, w_hh, b_ih, b_hh = _init_lstm_params(k_p, cfg.input_size, cfg.hidden_size)

    # One-time parameter prep (outside the per-call path).
    w_ih_t, w_hh_t, bias = prepare_encoder_params(w_ih, w_hh, b_ih, b_hh)
    jax.block_until_ready((w_ih_t, w_hh_t, bias))

    output, (h_n, c_n) = encoder_rnn_forward(inputs, w_ih_t, w_hh_t, bias)
    jax.block_until_ready((output, h_n, c_n))

    # Sanity check against the pure-JAX reference (raw PyTorch-style params).
    ref_out, (ref_h, ref_c) = _reference_lstm(inputs, w_ih, w_hh, b_ih, b_hh)
    assert output.shape == (batch, cfg.seq_len, cfg.hidden_size)
    assert h_n.shape == (1, batch, cfg.hidden_size)
    assert c_n.shape == (1, batch, cfg.hidden_size)
    assert jnp.allclose(output, ref_out, atol=1e-5)
    assert jnp.allclose(h_n, ref_h, atol=1e-5)
    assert jnp.allclose(c_n, ref_c, atol=1e-5)

    print("KERNEL_OK")
</pallas_src>

<mosaic_0001>
module attributes {stable_mosaic.version = 11 : i64} {
  func.func @_lstm_kernel(%arg0: memref<64x16xf32, #tpu.memory_space<vmem>>, %arg1: memref<16x128xf32, #tpu.memory_space<vmem>>, %arg2: memref<32x128xf32, #tpu.memory_space<vmem>>, %arg3: memref<1x128xf32, #tpu.memory_space<vmem>>, %arg4: memref<8x288xf32, #tpu.memory_space<vmem>>) attributes {dimension_semantics = [], scalar_prefetch = 0 : i64, scratch_operands = 0 : i64, tpu.core_type = #tpu.core_type<tc>} {
    %c0 = arith.constant 0 : index
    %c0_0 = arith.constant 0 : index
    %0 = vector.load %arg2[%c0, %c0_0] : memref<32x128xf32, #tpu.memory_space<vmem>>, vector<32x128xf32>
    %c0_1 = arith.constant 0 : index
    %c0_2 = arith.constant 0 : index
    %1 = vector.load %arg3[%c0_1, %c0_2] : memref<1x128xf32, #tpu.memory_space<vmem>>, vector<1x128xf32>
    %c0_3 = arith.constant 0 : index
    %c0_4 = arith.constant 0 : index
    %2 = vector.load %arg0[%c0_3, %c0_4] : memref<64x16xf32, #tpu.memory_space<vmem>>, vector<64x16xf32>
    %c0_5 = arith.constant 0 : index
    %c0_6 = arith.constant 0 : index
    %3 = vector.load %arg1[%c0_5, %c0_6] : memref<16x128xf32, #tpu.memory_space<vmem>>, vector<16x128xf32>
    %cst = arith.constant dense<0.000000e+00> : vector<64x128xf32>
    %4 = tpu.matmul %2, %3, %cst {dimension_numbers = #tpu.dot_dimension_numbers<[1], [0], [0], [1], [0, 0, 1, 1], [], []>} : vector<64x16xf32>, vector<16x128xf32>, vector<64x128xf32> -> vector<64x128xf32>
    %5 = vector.broadcast %1 : vector<1x128xf32> to vector<64x128xf32>
    %6 = arith.addf %4, %5 : vector<64x128xf32>
    %cst_7 = arith.constant 0.000000e+00 : f32
    %7 = vector.broadcast %cst_7 : f32 to vector<8x32xf32>
    %cst_8 = arith.constant 0.000000e+00 : f32
    %8 = vector.broadcast %cst_8 : f32 to vector<8x32xf32>
    %9 = vector.extract_strided_slice %6 {offsets = [0, 0], sizes = [8, 128], strides = [1, 1]} : vector<64x128xf32> to vector<8x128xf32>
    %cst_9 = arith.constant dense<0.000000e+00> : vector<8x128xf32>
    %10 = tpu.matmul %7, %0, %cst_9 {dimension_numbers = #tpu.dot_dimension_numbers<[1], [0], [0], [1], [0, 0, 1, 1], [], []>} : vector<8x32xf32>, vector<32x128xf32>, vector<8x128xf32> -> vector<8x128xf32>
    %11 = arith.addf %9, %10 : vector<8x128xf32>
    %12 = math.tanh %11 : vector<8x128xf32>
    %13 = vector.extract_strided_slice %12 {offsets = [0, 0], sizes = [8, 32], strides = [1, 1]} : vector<8x128xf32> to vector<8x32xf32>
    %cst_10 = arith.constant 1.000000e+00 : f32
    %14 = vector.broadcast %cst_10 : f32 to vector<8x32xf32>
    %15 = arith.addf %13, %14 : vector<8x32xf32>
    %cst_11 = arith.constant 5.000000e-01 : f32
    %16 = vector.broadcast %cst_11 : f32 to vector<8x32xf32>
    %17 = arith.mulf %16, %15 : vector<8x32xf32>
    %18 = vector.extract_strided_slice %12 {offsets = [0, 32], sizes = [8, 32], strides = [1, 1]} : vector<8x128xf32> to vector<8x32xf32>
    %cst_12 = arith.constant 1.000000e+00 : f32
    %19 = vector.broadcast %cst_12 : f32 to vector<8x32xf32>
    %20 = arith.addf %18, %19 : vector<8x32xf32>
    %cst_13 = arith.constant 5.000000e-01 : f32
    %21 = vector.broadcast %cst_13 : f32 to vector<8x32xf32>
    %22 = arith.mulf %21, %20 : vector<8x32xf32>
    %23 = vector.extract_strided_slice %12 {offsets = [0, 64], sizes = [8, 32], strides = [1, 1]} : vector<8x128xf32> to vector<8x32xf32>
    %24 = vector.extract_strided_slice %12 {offsets = [0, 96], sizes = [8, 32], strides = [1, 1]} : vector<8x128xf32> to vector<8x32xf32>
    %cst_14 = arith.constant 1.000000e+00 : f32
    %25 = vector.broadcast %cst_14 : f32 to vector<8x32xf32>
    %26 = arith.addf %24, %25 : vector<8x32xf32>
    %cst_15 = arith.constant 5.000000e-01 : f32
    %27 = vector.broadcast %cst_15 : f32 to vector<8x32xf32>
    %28 = arith.mulf %27, %26 : vector<8x32xf32>
    %29 = arith.mulf %22, %8 : vector<8x32xf32>
    %30 = arith.mulf %17, %23 : vector<8x32xf32>
    %31 = arith.addf %29, %30 : vector<8x32xf32>
    %32 = math.tanh %31 : vector<8x32xf32>
    %33 = arith.mulf %28, %32 : vector<8x32xf32>
    %34 = vector.extract_strided_slice %6 {offsets = [8, 0], sizes = [8, 128], strides = [1, 1]} : vector<64x128xf32> to vector<8x128xf32>
    %cst_16 = arith.constant dense<0.000000e+00> : vector<8x128xf32>
    %35 = tpu.matmul %33, %0, %cst_16 {dimension_numbers = #tpu.dot_dimension_numbers<[1], [0], [0], [1], [0, 0, 1, 1], [], []>} : vector<8x32xf32>, vector<32x128xf32>, vector<8x128xf32> -> vector<8x128xf32>
    %36 = arith.addf %34, %35 : vector<8x128xf32>
    %37 = math.tanh %36 : vector<8x128xf32>
    %38 = vector.extract_strided_slice %37 {offsets = [0, 0], sizes = [8, 32], strides = [1, 1]} : vector<8x128xf32> to vector<8x32xf32>
    %cst_17 = arith.constant 1.000000e+00 : f32
    %39 = vector.broadcast %cst_17 : f32 to vector<8x32xf32>
    %40 = arith.addf %38, %39 : vector<8x32xf32>
    %cst_18 = arith.constant 5.000000e-01 : f32
    %41 = vector.broadcast %cst_18 : f32 to vector<8x32xf32>
    %42 = arith.mulf %41, %40 : vector<8x32xf32>
    %43 = vector.extract_strided_slice %37 {offsets = [0, 32], sizes = [8, 32], strides = [1, 1]} : vector<8x128xf32> to vector<8x32xf32>
    %cst_19 = arith.constant 1.000000e+00 : f32
    %44 = vector.broadcast %cst_19 : f32 to vector<8x32xf32>
    %45 = arith.addf %43, %44 : vector<8x32xf32>
    %cst_20 = arith.constant 5.000000e-01 : f32
    %46 = vector.broadcast %cst_20 : f32 to vector<8x32xf32>
    %47 = arith.mulf %46, %45 : vector<8x32xf32>
    %48 = vector.extract_strided_slice %37 {offsets = [0, 64], sizes = [8, 32], strides = [1, 1]} : vector<8x128xf32> to vector<8x32xf32>
    %49 = vector.extract_strided_slice %37 {offsets = [0, 96], sizes = [8, 32], strides = [1, 1]} : vector<8x128xf32> to vector<8x32xf32>
    %cst_21 = arith.constant 1.000000e+00 : f32
    %50 = vector.broadcast %cst_21 : f32 to vector<8x32xf32>
    %51 = arith.addf %49, %50 : vector<8x32xf32>
    %cst_22 = arith.constant 5.000000e-01 : f32
    %52 = vector.broadcast %cst_22 : f32 to vector<8x32xf32>
    %53 = arith.mulf %52, %51 : vector<8x32xf32>
    %54 = arith.mulf %47, %31 : vector<8x32xf32>
    %55 = arith.mulf %42, %48 : vector<8x32xf32>
    %56 = arith.addf %54, %55 : vector<8x32xf32>
    %57 = math.tanh %56 : vector<8x32xf32>
    %58 = arith.mulf %53, %57 : vector<8x32xf32>
    %59 = vector.extract_strided_slice %6 {offsets = [16, 0], sizes = [8, 128], strides = [1, 1]} : vector<64x128xf32> to vector<8x128xf32>
    %cst_23 = arith.constant dense<0.000000e+00> : vector<8x128xf32>
    %60 = tpu.matmul %58, %0, %cst_23 {dimension_numbers = #tpu.dot_dimension_numbers<[1], [0], [0], [1], [0, 0, 1, 1], [], []>} : vector<8x32xf32>, vector<32x128xf32>, vector<8x128xf32> -> vector<8x128xf32>
    %61 = arith.addf %59, %60 : vector<8x128xf32>
    %62 = math.tanh %61 : vector<8x128xf32>
    %63 = vector.extract_strided_slice %62 {offsets = [0, 0], sizes = [8, 32], strides = [1, 1]} : vector<8x128xf32> to vector<8x32xf32>
    %cst_24 = arith.constant 1.000000e+00 : f32
    %64 = vector.broadcast %cst_24 : f32 to vector<8x32xf32>
    %65 = arith.addf %63, %64 : vector<8x32xf32>
    %cst_25 = arith.constant 5.000000e-01 : f32
    %66 = vector.broadcast %cst_25 : f32 to vector<8x32xf32>
    %67 = arith.mulf %66, %65 : vector<8x32xf32>
    %68 = vector.extract_strided_slice %62 {offsets = [0, 32], sizes = [8, 32], strides = [1, 1]} : vector<8x128xf32> to vector<8x32xf32>
    %cst_26 = arith.constant 1.000000e+00 : f32
    %69 = vector.broadcast %cst_26 : f32 to vector<8x32xf32>
    %70 = arith.addf %68, %69 : vector<8x32xf32>
    %cst_27 = arith.constant 5.000000e-01 : f32
    %71 = vector.broadcast %cst_27 : f32 to vector<8x32xf32>
    %72 = arith.mulf %71, %70 : vector<8x32xf32>
    %73 = vector.extract_strided_slice %62 {offsets = [0, 64], sizes = [8, 32], strides = [1, 1]} : vector<8x128xf32> to vector<8x32xf32>
    %74 = vector.extract_strided_slice %62 {offsets = [0, 96], sizes = [8, 32], strides = [1, 1]} : vector<8x128xf32> to vector<8x32xf32>
    %cst_28 = arith.constant 1.000000e+00 : f32
    %75 = vector.broadcast %cst_28 : f32 to vector<8x32xf32>
    %76 = arith.addf %74, %75 : vector<8x32xf32>
    %cst_29 = arith.constant 5.000000e-01 : f32
    %77 = vector.broadcast %cst_29 : f32 to vector<8x32xf32>
    %78 = arith.mulf %77, %76 : vector<8x32xf32>
    %79 = arith.mulf %72, %56 : vector<8x32xf32>
    %80 = arith.mulf %67, %73 : vector<8x32xf32>
    %81 = arith.addf %79, %80 : vector<8x32xf32>
    %82 = math.tanh %81 : vector<8x32xf32>
    %83 = arith.mulf %78, %82 : vector<8x32xf32>
    %84 = vector.extract_strided_slice %6 {offsets = [24, 0], sizes = [8, 128], strides = [1, 1]} : vector<64x128xf32> to vector<8x128xf32>
    %cst_30 = arith.constant dense<0.000000e+00> : vector<8x128xf32>
    %85 = tpu.matmul %83, %0, %cst_30 {dimension_numbers = #tpu.dot_dimension_numbers<[1], [0], [0], [1], [0, 0, 1, 1], [], []>} : vector<8x32xf32>, vector<32x128xf32>, vector<8x128xf32> -> vector<8x128xf32>
    %86 = arith.addf %84, %85 : vector<8x128xf32>
    %87 = math.tanh %86 : vector<8x128xf32>
    %88 = vector.extract_strided_slice %87 {offsets = [0, 0], sizes = [8, 32], strides = [1, 1]} : vector<8x128xf32> to vector<8x32xf32>
    %cst_31 = arith.constant 1.000000e+00 : f32
    %89 = vector.broadcast %cst_31 : f32 to vector<8x32xf32>
    %90 = arith.addf %88, %89 : vector<8x32xf32>
    %cst_32 = arith.constant 5.000000e-01 : f32
    %91 = vector.broadcast %cst_32 : f32 to vector<8x32xf32>
    %92 = arith.mulf %91, %90 : vector<8x32xf32>
    %93 = vector.extract_strided_slice %87 {offsets = [0, 32], sizes = [8, 32], strides = [1, 1]} : vector<8x128xf32> to vector<8x32xf32>
    %cst_33 = arith.constant 1.000000e+00 : f32
    %94 = vector.broadcast %cst_33 : f32 to vector<8x32xf32>
    %95 = arith.addf %93, %94 : vector<8x32xf32>
    %cst_34 = arith.constant 5.000000e-01 : f32
    %96 = vector.broadcast %cst_34 : f32 to vector<8x32xf32>
    %97 = arith.mulf %96, %95 : vector<8x32xf32>
    %98 = vector.extract_strided_slice %87 {offsets = [0, 64], sizes = [8, 32], strides = [1, 1]} : vector<8x128xf32> to vector<8x32xf32>
    %99 = vector.extract_strided_slice %87 {offsets = [0, 96], sizes = [8, 32], strides = [1, 1]} : vector<8x128xf32> to vector<8x32xf32>
    %cst_35 = arith.constant 1.000000e+00 : f32
    %100 = vector.broadcast %cst_35 : f32 to vector<8x32xf32>
    %101 = arith.addf %99, %100 : vector<8x32xf32>
    %cst_36 = arith.constant 5.000000e-01 : f32
    %102 = vector.broadcast %cst_36 : f32 to vector<8x32xf32>
    %103 = arith.mulf %102, %101 : vector<8x32xf32>
    %104 = arith.mulf %97, %81 : vector<8x32xf32>
    %105 = arith.mulf %92, %98 : vector<8x32xf32>
    %106 = arith.addf %104, %105 : vector<8x32xf32>
    %107 = math.tanh %106 : vector<8x32xf32>
    %108 = arith.mulf %103, %107 : vector<8x32xf32>
    %109 = vector.extract_strided_slice %6 {offsets = [32, 0], sizes = [8, 128], strides = [1, 1]} : vector<64x128xf32> to vector<8x128xf32>
    %cst_37 = arith.constant dense<0.000000e+00> : vector<8x128xf32>
    %110 = tpu.matmul %108, %0, %cst_37 {dimension_numbers = #tpu.dot_dimension_numbers<[1], [0], [0], [1], [0, 0, 1, 1], [], []>} : vector<8x32xf32>, vector<32x128xf32>, vector<8x128xf32> -> vector<8x128xf32>
    %111 = arith.addf %109, %110 : vector<8x128xf32>
    %112 = math.tanh %111 : vector<8x128xf32>
    %113 = vector.extract_strided_slice %112 {offsets = [0, 0], sizes = [8, 32], strides = [1, 1]} : vector<8x128xf32> to vector<8x32xf32>
    %cst_38 = arith.constant 1.000000e+00 : f32
    %114 = vector.broadcast %cst_38 : f32 to vector<8x32xf32>
    %115 = arith.addf %113, %114 : vector<8x32xf32>
    %cst_39 = arith.constant 5.000000e-01 : f32
    %116 = vector.broadcast %cst_39 : f32 to vector<8x32xf32>
    %117 = arith.mulf %116, %115 : vector<8x32xf32>
    %118 = vector.extract_strided_slice %112 {offsets = [0, 32], sizes = [8, 32], strides = [1, 1]} : vector<8x128xf32> to vector<8x32xf32>
    %cst_40 = arith.constant 1.000000e+00 : f32
    %119 = vector.broadcast %cst_40 : f32 to vector<8x32xf32>
    %120 = arith.addf %118, %119 : vector<8x32xf32>
    %cst_41 = arith.constant 5.000000e-01 : f32
    %121 = vector.broadcast %cst_41 : f32 to vector<8x32xf32>
    %122 = arith.mulf %121, %120 : vector<8x32xf32>
    %123 = vector.extract_strided_slice %112 {offsets = [0, 64], sizes = [8, 32], strides = [1, 1]} : vector<8x128xf32> to vector<8x32xf32>
    %124 = vector.extract_strided_slice %112 {offsets = [0, 96], sizes = [8, 32], strides = [1, 1]} : vector<8x128xf32> to vector<8x32xf32>
    %cst_42 = arith.constant 1.000000e+00 : f32
    %125 = vector.broadcast %cst_42 : f32 to vector<8x32xf32>
    %126 = arith.addf %124, %125 : vector<8x32xf32>
    %cst_43 = arith.constant 5.000000e-01 : f32
    %127 = vector.broadcast %cst_43 : f32 to vector<8x32xf32>
    %128 = arith.mulf %127, %126 : vector<8x32xf32>
    %129 = arith.mulf %122, %106 : vector<8x32xf32>
    %130 = arith.mulf %117, %123 : vector<8x32xf32>
    %131 = arith.addf %129, %130 : vector<8x32xf32>
    %132 = math.tanh %131 : vector<8x32xf32>
    %133 = arith.mulf %128, %132 : vector<8x32xf32>
    %134 = vector.extract_strided_slice %6 {offsets = [40, 0], sizes = [8, 128], strides = [1, 1]} : vector<64x128xf32> to vector<8x128xf32>
    %cst_44 = arith.constant dense<0.000000e+00> : vector<8x128xf32>
    %135 = tpu.matmul %133, %0, %cst_44 {dimension_numbers = #tpu.dot_dimension_numbers<[1], [0], [0], [1], [0, 0, 1, 1], [], []>} : vector<8x32xf32>, vector<32x128xf32>, vector<8x128xf32> -> vector<8x128xf32>
    %136 = arith.addf %134, %135 : vector<8x128xf32>
    %137 = math.tanh %136 : vector<8x128xf32>
    %138 = vector.extract_strided_slice %137 {offsets = [0, 0], sizes = [8, 32], strides = [1, 1]} : vector<8x128xf32> to vector<8x32xf32>
    %cst_45 = arith.constant 1.000000e+00 : f32
    %139 = vector.broadcast %cst_45 : f32 to vector<8x32xf32>
    %140 = arith.addf %138, %139 : vector<8x32xf32>
    %cst_46 = arith.constant 5.000000e-01 : f32
    %141 = vector.broadcast %cst_46 : f32 to vector<8x32xf32>
    %142 = arith.mulf %141, %140 : vector<8x32xf32>
    %143 = vector.extract_strided_slice %137 {offsets = [0, 32], sizes = [8, 32], strides = [1, 1]} : vector<8x128xf32> to vector<8x32xf32>
    %cst_47 = arith.constant 1.000000e+00 : f32
    %144 = vector.broadcast %cst_47 : f32 to vector<8x32xf32>
    %145 = arith.addf %143, %144 : vector<8x32xf32>
    %cst_48 = arith.constant 5.000000e-01 : f32
    %146 = vector.broadcast %cst_48 : f32 to vector<8x32xf32>
    %147 = arith.mulf %146, %145 : vector<8x32xf32>
    %148 = vector.extract_strided_slice %137 {offsets = [0, 64], sizes = [8, 32], strides = [1, 1]} : vector<8x128xf32> to vector<8x32xf32>
    %149 = vector.extract_strided_slice %137 {offsets = [0, 96], sizes = [8, 32], strides = [1, 1]} : vector<8x128xf32> to vector<8x32xf32>
    %cst_49 = arith.constant 1.000000e+00 : f32
    %150 = vector.broadcast %cst_49 : f32 to vector<8x32xf32>
    %151 = arith.addf %149, %150 : vector<8x32xf32>
    %cst_50 = arith.constant 5.000000e-01 : f32
    %152 = vector.broadcast %cst_50 : f32 to vector<8x32xf32>
    %153 = arith.mulf %152, %151 : vector<8x32xf32>
    %154 = arith.mulf %147, %131 : vector<8x32xf32>
    %155 = arith.mulf %142, %148 : vector<8x32xf32>
    %156 = arith.addf %154, %155 : vector<8x32xf32>
    %157 = math.tanh %156 : vector<8x32xf32>
    %158 = arith.mulf %153, %157 : vector<8x32xf32>
    %159 = vector.extract_strided_slice %6 {offsets = [48, 0], sizes = [8, 128], strides = [1, 1]} : vector<64x128xf32> to vector<8x128xf32>
    %cst_51 = arith.constant dense<0.000000e+00> : vector<8x128xf32>
    %160 = tpu.matmul %158, %0, %cst_51 {dimension_numbers = #tpu.dot_dimension_numbers<[1], [0], [0], [1], [0, 0, 1, 1], [], []>} : vector<8x32xf32>, vector<32x128xf32>, vector<8x128xf32> -> vector<8x128xf32>
    %161 = arith.addf %159, %160 : vector<8x128xf32>
    %162 = math.tanh %161 : vector<8x128xf32>
    %163 = vector.extract_strided_slice %162 {offsets = [0, 0], sizes = [8, 32], strides = [1, 1]} : vector<8x128xf32> to vector<8x32xf32>
    %cst_52 = arith.constant 1.000000e+00 : f32
    %164 = vector.broadcast %cst_52 : f32 to vector<8x32xf32>
    %165 = arith.addf %163, %164 : vector<8x32xf32>
    %cst_53 = arith.constant 5.000000e-01 : f32
    %166 = vector.broadcast %cst_53 : f32 to vector<8x32xf32>
    %167 = arith.mulf %166, %165 : vector<8x32xf32>
    %168 = vector.extract_strided_slice %162 {offsets = [0, 32], sizes = [8, 32], strides = [1, 1]} : vector<8x128xf32> to vector<8x32xf32>
    %cst_54 = arith.constant 1.000000e+00 : f32
    %169 = vector.broadcast %cst_54 : f32 to vector<8x32xf32>
    %170 = arith.addf %168, %169 : vector<8x32xf32>
    %cst_55 = arith.constant 5.000000e-01 : f32
    %171 = vector.broadcast %cst_55 : f32 to vector<8x32xf32>
    %172 = arith.mulf %171, %170 : vector<8x32xf32>
    %173 = vector.extract_strided_slice %162 {offsets = [0, 64], sizes = [8, 32], strides = [1, 1]} : vector<8x128xf32> to vector<8x32xf32>
    %174 = vector.extract_strided_slice %162 {offsets = [0, 96], sizes = [8, 32], strides = [1, 1]} : vector<8x128xf32> to vector<8x32xf32>
    %cst_56 = arith.constant 1.000000e+00 : f32
    %175 = vector.broadcast %cst_56 : f32 to vector<8x32xf32>
    %176 = arith.addf %174, %175 : vector<8x32xf32>
    %cst_57 = arith.constant 5.000000e-01 : f32
    %177 = vector.broadcast %cst_57 : f32 to vector<8x32xf32>
    %178 = arith.mulf %177, %176 : vector<8x32xf32>
    %179 = arith.mulf %172, %156 : vector<8x32xf32>
    %180 = arith.mulf %167, %173 : vector<8x32xf32>
    %181 = arith.addf %179, %180 : vector<8x32xf32>
    %182 = math.tanh %181 : vector<8x32xf32>
    %183 = arith.mulf %178, %182 : vector<8x32xf32>
    %184 = vector.extract_strided_slice %6 {offsets = [56, 0], sizes = [8, 128], strides = [1, 1]} : vector<64x128xf32> to vector<8x128xf32>
    %cst_58 = arith.constant dense<0.000000e+00> : vector<8x128xf32>
    %185 = tpu.matmul %183, %0, %cst_58 {dimension_numbers = #tpu.dot_dimension_numbers<[1], [0], [0], [1], [0, 0, 1, 1], [], []>} : vector<8x32xf32>, vector<32x128xf32>, vector<8x128xf32> -> vector<8x128xf32>
    %186 = arith.addf %184, %185 : vector<8x128xf32>
    %187 = math.tanh %186 : vector<8x128xf32>
    %188 = vector.extract_strided_slice %187 {offsets = [0, 0], sizes = [8, 32], strides = [1, 1]} : vector<8x128xf32> to vector<8x32xf32>
    %cst_59 = arith.constant 1.000000e+00 : f32
    %189 = vector.broadcast %cst_59 : f32 to vector<8x32xf32>
    %190 = arith.addf %188, %189 : vector<8x32xf32>
    %cst_60 = arith.constant 5.000000e-01 : f32
    %191 = vector.broadcast %cst_60 : f32 to vector<8x32xf32>
    %192 = arith.mulf %191, %190 : vector<8x32xf32>
    %193 = vector.extract_strided_slice %187 {offsets = [0, 32], sizes = [8, 32], strides = [1, 1]} : vector<8x128xf32> to vector<8x32xf32>
    %cst_61 = arith.constant 1.000000e+00 : f32
    %194 = vector.broadcast %cst_61 : f32 to vector<8x32xf32>
    %195 = arith.addf %193, %194 : vector<8x32xf32>
    %cst_62 = arith.constant 5.000000e-01 : f32
    %196 = vector.broadcast %cst_62 : f32 to vector<8x32xf32>
    %197 = arith.mulf %196, %195 : vector<8x32xf32>
    %198 = vector.extract_strided_slice %187 {offsets = [0, 64], sizes = [8, 32], strides = [1, 1]} : vector<8x128xf32> to vector<8x32xf32>
    %199 = vector.extract_strided_slice %187 {offsets = [0, 96], sizes = [8, 32], strides = [1, 1]} : vector<8x128xf32> to vector<8x32xf32>
    %cst_63 = arith.constant 1.000000e+00 : f32
    %200 = vector.broadcast %cst_63 : f32 to vector<8x32xf32>
    %201 = arith.addf %199, %200 : vector<8x32xf32>
    %cst_64 = arith.constant 5.000000e-01 : f32
    %202 = vector.broadcast %cst_64 : f32 to vector<8x32xf32>
    %203 = arith.mulf %202, %201 : vector<8x32xf32>
    %204 = arith.mulf %197, %181 : vector<8x32xf32>
    %205 = arith.mulf %192, %198 : vector<8x32xf32>
    %206 = arith.addf %204, %205 : vector<8x32xf32>
    %207 = math.tanh %206 : vector<8x32xf32>
    %208 = arith.mulf %203, %207 : vector<8x32xf32>
    %209 = tpu.concatenate %33, %58, %83, %108, %133, %158, %183, %208, %206 in 1 : vector<8x32xf32>, vector<8x32xf32>, vector<8x32xf32>, vector<8x32xf32>, vector<8x32xf32>, vector<8x32xf32>, vector<8x32xf32>, vector<8x32xf32>, vector<8x32xf32> -> vector<8x288xf32>
    %c0_65 = arith.constant 0 : index
    %c0_66 = arith.constant 0 : index
    %210 = vector.load %arg4[%c0_65, %c0_66] : memref<8x288xf32, #tpu.memory_space<vmem>>, vector<8x288xf32>
    tpu.vector_store %arg4[%c0_65, %c0_66], %209 {strides = array<i32>} : memref<8x288xf32, #tpu.memory_space<vmem>>, vector<8x288xf32>,
    return
  }
}

</mosaic_0001>

<bundles_post_ra>
// kernel: encoder_rnn_forward.1
= control target key start
LH: loop header
LB: loop body
LE: loop exit
PB: predicated region body
PF: predicated region fallthrough
CT: control target
= control target key end

     0   :  { %vm38_vm0 = vcmask 130048   ;;  %v1228_v0 = vmov 0.0|0.0   ;;  %vm1229_vm1 = vmmov 0   ;;  %v1230_v4 = vmov 0.0   ;;  %s1231_s5 = smov 64   ;;  %s1232_s6 = smov 32   ;;  %s1463_s1 = inlined_call_operand.vmem [shape: f32[16,128], index: 1, kind: input, shape index: {}]   ;;  %s1464_s2 = inlined_call_operand.vmem [shape: f32[32,128], index: 2, kind: input, shape index: {}]   ;;  %s1465_s0 = inlined_call_operand.vmem [shape: f32[64,16], index: 0, kind: input, shape index: {}]   ;;  %s1466_s3 = inlined_call_operand.vmem [shape: f32[1,128], index: 3, kind: input, shape index: {}]   ;;  %s1467_s4 = inlined_call_operand.vmem [shape: f32[8,288], index: 4, kind: output, shape index: {}]  }
   0x1   :  { %1142 = vmatprep.subr.bf16.mxu1 %v1228_v0  ;;  %v30_v1 = vld [vmem:[%s1463_s1] sm:$0xff]  ;;  %v31_v2 = vld [vmem:[%s1463_s1 + $0x8] sm:$0xff]  ;;  %1058 = vmatprep.mubr.msk.f32.mxu1 %vm1229_vm1, %v1230_v4  ;;  %v19_v9 = vld [vmem:[%s1464_s2 + $0x10] sm:$0xff]  ;;  %vm168_vm2 = vcmask 261120   ;;  %vm954_vm3 = vcmask 523264   ;;  %vm956_vm4 = vcmask 785408  }
   0x2   :  { %v17_v3 = vld [vmem:[%s1464_s2] sm:$0xff]  ;;  %v1138_v5 = vpack.c.bf16 %v31_v2, %v30_v1  ;;  %v18_v6 = vld [vmem:[%s1464_s2 + $0x8] sm:$0xff]  ;;  %v20_v10 = vld [vmem:[%s1464_s2 + $0x18] sm:$0xff] }
   0x3   :  { %v22_v7 = vld [vmem:[%s1465_s0] sm:$0xff]  ;;  %v1277_v8 = vpack.c.bf16 %v18_v6, %v17_v3  ;;  %v23_v11 = vld [vmem:[%s1465_s0 + $0x8] sm:$0xff]  ;;  %v1290_v12 = vpack.c.bf16 %v20_v10, %v19_v9  ;;  %v24_v44 = vld [vmem:[%s1465_s0 + $0x10] sm:$0xff] }
   0x4   :  { %1038 = vmatprep.mubr.msk.f32.mxu0 %vm38_vm0, %v22_v7  ;;  %1139 = vmatprep.subr.bf16.mxu0 %v1138_v5  ;;  %v1311_v13 = vld [vmem:[%s1466_s3] ss:$0 sm:$0xff]  ;;  %v25_v45 = vld [vmem:[%s1465_s0 + $0x18] sm:$0xff]  ;;  %v27_v47 = vld [vmem:[%s1465_s0 + $0x28] sm:$0xff] }
   0x5   :  { %1144 = vmatpush3.bf16.msra.mxu1 %v1277_v8  ;;  %1141 = vmatpush3.bf16.msra.mxu0 %v1138_v5  ;;  %v26_v46 = vld [vmem:[%s1465_s0 + $0x20] sm:$0xff]  ;;  %v28_v48 = vld [vmem:[%s1465_s0 + $0x30] sm:$0xff]  ;;  %v29_v49 = vld [vmem:[%s1465_s0 + $0x38] sm:$0xff]  ;;  %s1233_s0 = smov 96  }
   0x6   :  { %1145 = vmatprep.subr.bf16.mxu1 %v1228_v0  ;;  %1154 = vmatprep.subr.bf16.mxu0 %v1228_v0 }
   0x8   :  { %1039 = vmatmul.mubr.msk.f32.vlgmr.msra.gmra.mrb[0].mxu0 %vm38_vm0, %v23_v11 }
   0x9   :  { %1147 = vmatpush3.bf16.msra.mxu1 %v1290_v12  ;;  %1156 = vmatpush3.bf16.msra.mxu0 %v1277_v8 }
   0xa   :  { %1148 = vmatprep.subr.bf16.mxu1 %v1228_v0  ;;  %1157 = vmatprep.subr.bf16.mxu0 %v1228_v0 }
   0xb   :  { %1041 = vmatprep.mubr.msk.f32.mxu0 %vm38_vm0, %v24_v44 }
   0xc   :  { %1059 = vmatmul.mubr.f32.vlgmr.msra.gmra.mrb[0].mxu1 %v1230_v4  ;;  %1042 = vmatmul.mubr.msk.f32.gmra.mrb[2].mxu0 %vm38_vm0, %v25_v45 }
   0xd   :  { %1150 = vmatpush3.bf16.msra.mxu1 %v1277_v8  ;;  %1069 = vmatprep.mubr.msk.f32.mxu1 %vm1229_vm1, %v1230_v4 }
   0xe   :  { %1151 = vmatprep.subr.bf16.mxu1 %v1228_v0  ;;  %1159 = vmatpush3.bf16.msra.mxu0 %v1290_v12 }
   0xf   :  { %1166 = vmatprep.subr.bf16.mxu0 %v1228_v0  ;;  %1044 = vmatprep.mubr.msk.f32.mxu0 %vm38_vm0, %v26_v46 }
  0x10   :  { %1045 = vmatmul.mubr.msk.f32.gmra.mrb[4].mxu0 %vm38_vm0, %v27_v47 }
  0x11   :  { %1153 = vmatpush3.bf16.msra.mxu1 %v1290_v12  ;;  %1047 = vmatprep.mubr.msk.f32.mxu0 %vm38_vm0, %v28_v48 }
  0x12   :  { %1160 = vmatprep.subr.bf16.mxu1 %v1228_v0 }
  0x14   :  { %1048 = vmatmul.mubr.msk.f32.gmra.mrb[6].mxu0 %vm38_vm0, %v29_v49 }
  0x15   :  { %1080 = vmatprep.mubr.msk.f32.mxu0 %vm1229_vm1, %v1230_v4 }
  0xdb   :  { %v1040_v14 = vpop.f32.mrb[0].mxu0 }
  0xdc   :  { %v129_v15 = vpop.f32.mrb[1].mxu0  ;;  %v135_v32 = vadd.f32 %v1040_v14, %v1311_v13 }
  0xdd   :  { %v130_v16 = vadd.f32 %v1311_v13, %v129_v15 }
  0xdf   :  { %v238_v17 = vpop.f32.mrb[0].mxu1  ;;  %v1043_v53 = vpop.f32.mrb[2].mxu0 }
  0xe0   :  { %v242_v18 = vadd.f32 %v238_v17, %v130_v16  ;;  %v1060_v19 = vpop.f32.mrb[1].mxu1  ;;  %v139_v54 = vpop.f32.mrb[3].mxu0  ;;  %v145_v17 = vadd.f32 %v1043_v53, %v1311_v13 }
  0xe1   :  { %v140_v60 = vadd.f32 %v1311_v13, %v139_v54 }
  0xe2   :  { %1196 = vtanh.f32 %v242_v18 }
  0xe3   :  { %v1362_v55 = vpop.f32.mrb[4].mxu0 }
  0xe4   :  { %v1364_v56 = vpop.f32.mrb[5].mxu0 }
  0xe7   :  { %v1366_v57 = vpop.f32.mrb[6].mxu0 }
  0xe8   :  { %v1368_v58 = vpop.f32.mrb[7].mxu0 }
  0xec   :  { %v1197_v20 = vpop.eup %1196 }
  0xed   :  { %248 = vrot.lane.b32.xlu0 %v1197_v20, %s1231_s5  ;;  %v244_v21 = vadd.f32 1.0, %v1197_v20 }
  0xef   :  { %v245_v22 = vmul.f32 0.5, %v244_v21 }
  0xf1   :  { %v246_v25 = vmul.f32 0.0, %v245_v22 }
 0x15f   :  { %v249_v23 = vpop.permute.xlu0 %248 }
 0x160   :  { %v251_v24 = vmul.f32 %v249_v23, %v245_v22 }
 0x162   :  { %253 = vrot.lane.b32.xlu0 %v251_v24, %s1232_s6 }
 0x1d4   :  { %v254_v26 = vpop.permute.xlu0 %253 }
 0x1d5   :  { %v256_v27 = vadd.f32 %v254_v26, %v246_v25 }
 0x1d7   :  { %1198 = vtanh.f32 %v256_v27 }
 0x1e1   :  { %v1199_v28 = vpop.eup %1198 }
 0x1e2   :  { %259 = vrot.lane.b32.xlu1 %v1199_v28, %s1231_s5 }
 0x254   :  { %v260_v29 = vpop.permute.xlu1 %259 }
 0x255   :  { %v262_v30 = vmul.f32 %v260_v29, %v245_v22 }
 0x257   :  { %264 = vrot.lane.b32.xlu1 %v262_v30, %s1232_s6 }
 0x2c9   :  { %v1318_v31 = vpop.permute.xlu1 %264 }
 0x2ca   :  { %1070 = vmatmul.mubr.msk.f32.vlgmr.msra.gmra.mrb[2].mxu1 %vm168_vm2, %v1318_v31 }
 0x2cb   :  { %1162 = vmatpush3.bf16.msra.mxu1 %v1277_v8  ;;  %1091 = vmatprep.mubr.msk.f32.mxu1 %vm1229_vm1, %v1230_v4 }
 0x2cc   :  { %1163 = vmatprep.subr.bf16.mxu1 %v1228_v0 }
 0x2cf   :  { %1165 = vmatpush3.bf16.msra.mxu1 %v1290_v12 }
 0x2d0   :  { %1172 = vmatprep.subr.bf16.mxu1 %v1228_v0 }
 0x39d   :  { %v334_v33 = vpop.f32.mrb[2].mxu1 }
 0x39e   :  { %v338_v34 = vadd.f32 %v334_v33, %v135_v32  ;;  %v1071_v35 = vpop.f32.mrb[3].mxu1 }
 0x3a0   :  { %1200 = vtanh.f32 %v338_v34  ;;  %v150_v34 = vadd.f32 %v1311_v13, %v1364_v56 }
 0x3aa   :  { %v1201_v36 = vpop.eup %1200 }
 0x3ab   :  { %344 = vrot.lane.b32.xlu0 %v1201_v36, %s1231_s5  ;;  %v340_v37 = vadd.f32 1.0, %v1201_v36 }
 0x3ad   :  { %v341_v38 = vmul.f32 0.5, %v340_v37 }
 0x3af   :  { %v342_v41 = vmul.f32 %v341_v38, %v256_v27 }
 0x41d   :  { %v345_v39 = vpop.permute.xlu0 %344 }
 0x41e   :  { %v347_v40 = vmul.f32 %v345_v39, %v341_v38 }
 0x420   :  { %349 = vrot.lane.b32.xlu1 %v347_v40, %s1232_s6 }
 0x492   :  { %v350_v42 = vpop.permute.xlu1 %349 }
 0x493   :  { %v352_v43 = vadd.f32 %v350_v42, %v342_v41 }
 0x495   :  { %1202 = vtanh.f32 %v352_v43 }
 0x49f   :  { %v1203_v50 = vpop.eup %1202 }
 0x4a0   :  { %355 = vrot.lane.b32.xlu0 %v1203_v50, %s1231_s5  ;;  %v155_v50 = vadd.f32 %v1362_v55, %v1311_v13 }
 0x512   :  { %v356_v51 = vpop.permute.xlu0 %355 }
 0x513   :  { %v1358_v52 = vmul.f32 %v356_v51, %v341_v38 }
 0x515   :  { %360 = vrot.lane.b32.xlu1 %v1358_v52, %s1232_s6 }
 0x587   :  { %v361_v59 = vpop.permute.xlu1 %360 }
 0x588   :  { %1081 = vmatmul.mubr.msk.f32.vlgmr.msra.gmra.mrb[8].mxu0 %vm168_vm2, %v361_v59 }
 0x589   :  { %1168 = vmatpush3.bf16.msra.mxu0 %v1277_v8  ;;  %1102 = vmatprep.mubr.msk.f32.mxu0 %vm1229_vm1, %v1230_v4 }
 0x58a   :  { %1169 = vmatprep.subr.bf16.mxu0 %v1228_v0 }
 0x58d   :  { %1171 = vmatpush3.bf16.msra.mxu0 %v1290_v12 }
 0x58e   :  { %1178 = vmatprep.subr.bf16.mxu0 %v1228_v0 }
 0x65b   :  { %v430_v61 = vpop.f32.mrb[8].mxu0 }
 0x65c   :  { %v434_v62 = vadd.f32 %v430_v61, %v140_v60  ;;  %v1082_v63 = vpop.f32.mrb[9].mxu0 }
 0x65e   :  { %1204 = vtanh.f32 %v434_v62 }
 0x668   :  { %v1205_v1 = vpop.eup %1204 }
 0x669   :  { %440 = vrot.lane.b32.xlu0 %v1205_v1, %s1231_s5  ;;  %v436_v2 = vadd.f32 1.0, %v1205_v1 }
 0x66b   :  { %v437_v3 = vmul.f32 0.5, %v436_v2  ;;  %v160_v2 = vadd.f32 %v1311_v13, %v1368_v58 }
 0x66d   :  { %v438_v7 = vmul.f32 %v437_v3, %v352_v43 }
 0x6db   :  { %v441_v5 = vpop.permute.xlu0 %440 }
 0x6dc   :  { %v443_v6 = vmul.f32 %v441_v5, %v437_v3 }
 0x6de   :  { %445 = vrot.lane.b32.xlu1 %v443_v6, %s1232_s6 }
 0x750   :  { %v446_v9 = vpop.permute.xlu1 %445 }
 0x751   :  { %v448_v10 = vadd.f32 %v446_v9, %v438_v7 }
 0x753   :  { %1206 = vtanh.f32 %v448_v10 }
 0x75d   :  { %v1207_v11 = vpop.eup %1206 }
 0x75e   :  { %451 = vrot.lane.b32.xlu0 %v1207_v11, %s1231_s5 }
 0x7d0   :  { %v452_v14 = vpop.permute.xlu0 %451 }
 0x7d1   :  { %v1381_v15 = vmul.f32 %v452_v14, %v437_v3 }
 0x7d3   :  { %456 = vrot.lane.b32.xlu1 %v1381_v15, %s1232_s6 }
 0x845   :  { %v457_v16 = vpop.permute.xlu1 %456 }
 0x846   :  { %1092 = vmatmul.mubr.msk.f32.vlgmr.msra.gmra.mrb[4].mxu1 %vm168_vm2, %v457_v16 }
 0x847   :  { %1174 = vmatpush3.bf16.msra.mxu1 %v1277_v8  ;;  %1113 = vmatprep.mubr.msk.f32.mxu1 %vm1229_vm1, %v1230_v4 }
 0x848   :  { %1175 = vmatprep.subr.bf16.mxu1 %v1228_v0 }
 0x84b   :  { %1177 = vmatpush3.bf16.msra.mxu1 %v1290_v12 }
 0x84c   :  { %1184 = vmatprep.subr.bf16.mxu1 %v1228_v0 }
 0x919   :  { %v526_v18 = vpop.f32.mrb[4].mxu1 }
 0x91a   :  { %v530_v19 = vadd.f32 %v526_v18, %v145_v17  ;;  %v1093_v20 = vpop.f32.mrb[5].mxu1 }
 0x91c   :  { %1208 = vtanh.f32 %v530_v19 }
 0x926   :  { %v1209_v21 = vpop.eup %1208 }
 0x927   :  { %536 = vrot.lane.b32.xlu0 %v1209_v21, %s1231_s5  ;;  %v532_v22 = vadd.f32 1.0, %v1209_v21 }
 0x929   :  { %v533_v23 = vmul.f32 0.5, %v532_v22  ;;  %v165_v22 = vadd.f32 %v1366_v57, %v1311_v13 }
 0x92b   :  { %v534_v26 = vmul.f32 %v533_v23, %v448_v10 }
 0x999   :  { %v537_v24 = vpop.permute.xlu0 %536 }
 0x99a   :  { %v539_v25 = vmul.f32 %v537_v24, %v533_v23 }
 0x99c   :  { %541 = vrot.lane.b32.xlu1 %v539_v25, %s1232_s6 }
 0xa0e   :  { %v542_v27 = vpop.permute.xlu1 %541 }
 0xa0f   :  { %v544_v28 = vadd.f32 %v542_v27, %v534_v26 }
 0xa11   :  { %1210 = vtanh.f32 %v544_v28 }
 0xa1b   :  { %v1211_v29 = vpop.eup %1210 }
 0xa1c   :  { %547 = vrot.lane.b32.xlu0 %v1211_v29, %s1231_s5 }
 0xa8e   :  { %v548_v30 = vpop.permute.xlu0 %547 }
 0xa8f   :  { %v1396_v32 = vmul.f32 %v548_v30, %v533_v23 }
 0xa91   :  { %552 = vrot.lane.b32.xlu1 %v1396_v32, %s1232_s6 }
 0xb03   :  { %v553_v33 = vpop.permute.xlu1 %552 }
 0xb04   :  { %1103 = vmatmul.mubr.msk.f32.vlgmr.msra.gmra.mrb[10].mxu0 %vm168_vm2, %v553_v33 }
 0xb05   :  { %1180 = vmatpush3.bf16.msra.mxu0 %v1277_v8  ;;  %1124 = vmatprep.mubr.msk.f32.mxu0 %vm1229_vm1, %v1230_v4 }
 0xb06   :  { %1181 = vmatprep.subr.bf16.mxu0 %v1228_v0 }
 0xb09   :  { %1183 = vmatpush3.bf16.msra.mxu0 %v1290_v12 }
 0xbd7   :  { %v622_v35 = vpop.f32.mrb[10].mxu0 }
 0xbd8   :  { %v626_v36 = vadd.f32 %v622_v35, %v150_v34  ;;  %v1104_v37 = vpop.f32.mrb[11].mxu0 }
 0xbda   :  { %1212 = vtanh.f32 %v626_v36 }
 0xbe4   :  { %v1213_v38 = vpop.eup %1212 }
 0xbe5   :  { %632 = vrot.lane.b32.xlu0 %v1213_v38, %s1231_s5  ;;  %v628_v39 = vadd.f32 1.0, %v1213_v38 }
 0xbe7   :  { %v629_v40 = vmul.f32 0.5, %v628_v39 }
 0xbe9   :  { %v630_v43 = vmul.f32 %v629_v40, %v544_v28 }
 0xc57   :  { %v633_v41 = vpop.permute.xlu0 %632 }
 0xc58   :  { %v635_v42 = vmul.f32 %v633_v41, %v629_v40 }
 0xc5a   :  { %637 = vrot.lane.b32.xlu1 %v635_v42, %s1232_s6 }
 0xccc   :  { %v638_v44 = vpop.permute.xlu1 %637 }
 0xccd   :  { %v640_v45 = vadd.f32 %v638_v44, %v630_v43 }
 0xccf   :  { %1214 = vtanh.f32 %v640_v45 }
 0xcd9   :  { %v1215_v46 = vpop.eup %1214 }
 0xcda   :  { %643 = vrot.lane.b32.xlu0 %v1215_v46, %s1231_s5 }
 0xd4c   :  { %v644_v47 = vpop.permute.xlu0 %643 }
 0xd4d   :  { %v646_v48 = vmul.f32 %v644_v47, %v629_v40 }
 0xd4f   :  { %648 = vrot.lane.b32.xlu1 %v646_v48, %s1232_s6 }
 0xdc1   :  { %v1412_v49 = vpop.permute.xlu1 %648 }
 0xdc2   :  { %1114 = vmatmul.mubr.msk.f32.vlgmr.msra.gmra.mrb[6].mxu1 %vm168_vm2, %v1412_v49 }
 0xdc3   :  { %1186 = vmatpush3.bf16.msra.mxu1 %v1277_v8  ;;  %1135 = vmatprep.mubr.msk.f32.mxu1 %vm1229_vm1, %v1230_v4 }
 0xdc4   :  { %1187 = vmatprep.subr.bf16.mxu1 %v1228_v0 }
 0xdc7   :  { %1189 = vmatpush3.bf16.msra.mxu1 %v1290_v12 }
 0xe95   :  { %v718_v51 = vpop.f32.mrb[6].mxu1 }
 0xe96   :  { %v722_v53 = vadd.f32 %v718_v51, %v155_v50  ;;  %v1115_v54 = vpop.f32.mrb[7].mxu1 }
 0xe98   :  { %1216 = vtanh.f32 %v722_v53 }
 0xea2   :  { %v1217_v56 = vpop.eup %1216 }
 0xea3   :  { %728 = vrot.lane.b32.xlu0 %v1217_v56, %s1231_s5  ;;  %v724_v59 = vadd.f32 1.0, %v1217_v56 }
 0xea5   :  { %v725_v60 = vmul.f32 0.5, %v724_v59 }
 0xea7   :  { %v726_v4 = vmul.f32 %v725_v60, %v640_v45 }
 0xf15   :  { %v729_v8 = vpop.permute.xlu0 %728 }
 0xf16   :  { %v731_v61 = vmul.f32 %v729_v8, %v725_v60 }
 0xf18   :  { %733 = vrot.lane.b32.xlu1 %v731_v61, %s1232_s6 }
 0xf8a   :  { %v734_v0 = vpop.permute.xlu1 %733 }
 0xf8b   :  { %v736_v62 = vadd.f32 %v734_v0, %v726_v4 }
 0xf8d   :  { %1218 = vtanh.f32 %v736_v62 }
 0xf97   :  { %v1219_v12 = vpop.eup %1218 }
 0xf98   :  { %739 = vrot.lane.b32.xlu0 %v1219_v12, %s1231_s5 }
0x100a   :  { %v740_v55 = vpop.permute.xlu0 %739 }
0x100b   :  { %v742_v63 = vmul.f32 %v740_v55, %v725_v60 }
0x100d   :  { %744 = vrot.lane.b32.xlu1 %v742_v63, %s1232_s6 }
0x107f   :  { %v745_v1 = vpop.permute.xlu1 %744 }
0x1080   :  { %1125 = vmatmul.mubr.msk.f32.vlgmr.msra.gmra.mrb[12].mxu0 %vm168_vm2, %v745_v1 }
0x1153   :  { %v814_v3 = vpop.f32.mrb[12].mxu0 }
0x1154   :  { %v818_v5 = vadd.f32 %v814_v3, %v160_v2  ;;  %v1126_v6 = vpop.f32.mrb[13].mxu0 }
0x1156   :  { %1220 = vtanh.f32 %v818_v5 }
0x1160   :  { %v1221_v7 = vpop.eup %1220 }
0x1161   :  { %824 = vrot.lane.b32.xlu0 %v1221_v7, %s1231_s5  ;;  %v820_v9 = vadd.f32 1.0, %v1221_v7 }
0x1163   :  { %v821_v10 = vmul.f32 0.5, %v820_v9 }
0x1165   :  { %v822_v16 = vmul.f32 %v821_v10, %v736_v62 }
0x11d3   :  { %v825_v11 = vpop.permute.xlu0 %824 }
0x11d4   :  { %v827_v14 = vmul.f32 %v825_v11, %v821_v10 }
0x11d6   :  { %829 = vrot.lane.b32.xlu1 %v827_v14, %s1232_s6 }
0x1248   :  { %v830_v17 = vpop.permute.xlu1 %829 }
0x1249   :  { %v832_v18 = vadd.f32 %v830_v17, %v822_v16 }
0x124b   :  { %1222 = vtanh.f32 %v832_v18 }
0x1255   :  { %v1223_v19 = vpop.eup %1222 }
0x1256   :  { %835 = vrot.lane.b32.xlu0 %v1223_v19, %s1231_s5 }
0x12c8   :  { %v836_v58 = vpop.permute.xlu0 %835 }
0x12c9   :  { %v838_v20 = vmul.f32 %v836_v58, %v821_v10 }
0x12cb   :  { %840 = vrot.lane.b32.xlu1 %v838_v20, %s1232_s6 }
0x133d   :  { %v841_v21 = vpop.permute.xlu1 %840 }
0x133e   :  { %1136 = vmatmul.mubr.msk.f32.vlgmr.msra.gmra.mrb[8].mxu1 %vm168_vm2, %v841_v21 }
0x1411   :  { %v910_v23 = vpop.f32.mrb[8].mxu1 }
0x1412   :  { %v914_v24 = vadd.f32 %v910_v23, %v165_v22  ;;  %v1137_v25 = vpop.f32.mrb[9].mxu1 }
0x1414   :  { %1224 = vtanh.f32 %v914_v24 }
0x141e   :  { %v1225_v26 = vpop.eup %1224 }
0x141f   :  { %920 = vrot.lane.b32.xlu0 %v1225_v26, %s1231_s5  ;;  %v916_v27 = vadd.f32 1.0, %v1225_v26 }
0x1421   :  { %v917_v28 = vmul.f32 0.5, %v916_v27 }
0x1423   :  { %943 = vrot.lane.b32.xlu0 %v742_v63, %s1231_s5  ;;  %v918_v13 = vmul.f32 %v917_v28, %v832_v18 }
0x1491   :  { %v921_v29 = vpop.permute.xlu0 %920 }
0x1492   :  { %v923_v30 = vmul.f32 %v921_v29, %v917_v28 }
0x1494   :  { %925 = vrot.lane.b32.xlu1 %v923_v30, %s1232_s6 }
0x1498   :  { %936 = vrot.lane.b32.xlu1 %v1358_v52, %s1231_s5 }
0x149c   :  { %939 = vrot.lane.b32.xlu1 %v1381_v15, %s1233_s0 }
0x1506   :  { %v926_v57 = vpop.permute.xlu1 %925 }
0x1507   :  { %v928_v33 = vadd.f32 %v926_v57, %v918_v13 }
0x1509   :  { %1226 = vtanh.f32 %v928_v33  ;;  %950 = vrot.lane.b32.xlu1 %v928_v33, %s1233_s0 }
0x150a   :  { %v937_v34 = vpop.permute.xlu1 %936 }
0x150b   :  { %v953_v35 = vsel %vm168_vm2, %v1318_v31, %v937_v34  ;;  %v944_v31 = vpop.permute.xlu0 %943 }
0x150c   :  { %v958_v40 = vsel %vm168_vm2, %v1412_v49, %v944_v31 }
0x150e   :  { %v940_v36 = vpop.permute.xlu1 %939 }
0x150f   :  { %v955_v37 = vsel %vm954_vm3, %v953_v35, %v940_v36 }
0x1510   :  { %v957_v52 = vsel %vm956_vm4, %v955_v37, %v1396_v32 }
0x1511   :  { %961 = vst [vmem:[%s1467_s4] sm:$0xff] %v957_v52 }
0x1513   :  { %v1227_v15 = vpop.eup %1226 }
0x1514   :  { %931 = vrot.lane.b32.xlu0 %v1227_v15, %s1231_s5 }
0x1518   :  { %946 = vrot.lane.b32.xlu0 %v838_v20, %s1233_s0 }
0x157b   :  { %v951_v38 = vpop.permute.xlu1 %950 }
0x157c   :  { %963 = vst.msk [vmem:[%s1467_s4 + $0x10] sm:$0xff] %vm168_vm2, %v951_v38 }
0x1586   :  { %v932_v39 = vpop.permute.xlu0 %931 }
0x1587   :  { %v934_v32 = vmul.f32 %v932_v39, %v917_v28 }
0x158a   :  { %v947_v41 = vpop.permute.xlu0 %946 }
0x158b   :  { %v959_v42 = vsel %vm954_vm3, %v958_v40, %v947_v41 }
0x158c   :  { %v960_v43 = vsel %vm956_vm4, %v959_v42, %v934_v32 }
0x158d   :  { %962 = vst [vmem:[%s1467_s4 + $0x8] sm:$0xff] %v960_v43 }

</bundles_post_ra>
